<compile_context>
chip_gen: v5e
topology: v5e:2x2
jax: 0.10.0
libtpu: 0.0.40
codegen_flags: <defaults>
</compile_context>

<pallas_src>
import jax
import jax.numpy as jnp
from jax.experimental import pallas as pl
from jax.experimental.pallas import tpu as pltpu


def _round_up(n, m):
    return ((n + m - 1) // m) * m


def _mlp_kernel(x_ref, w1_ref, b1_ref, w2_ref, b2_ref, o_ref):
    # ---- Layer 1 on the MXU, all f32 (K = n_feature is tiny; padded inside) -
    h = jnp.dot(x_ref[...], w1_ref[...], preferred_element_type=jnp.float32)
    h = jnp.maximum(h + b1_ref[...], 0.0)          # bias + ReLU in f32

    # ---- Layer 2 on the MXU: cast h only right before the dot --------------
    # (bf16 fast path on v6e/v7x when W2 was prepared in bf16; exact when f32)
    y = jnp.dot(h.astype(w2_ref.dtype), w2_ref[...],
                preferred_element_type=jnp.float32)
    o_ref[...] = (y + b2_ref[...]).astype(o_ref.dtype)


def prepare_params(w1, b1, w2, b2, *, mxu_dtype=jnp.bfloat16, pad_to=128):
    """One-time param prep: transpose to (in, out) layout, pad lanes to 128.

    Only W2 (the layer-2 MXU operand) takes `mxu_dtype`; W1/b1/b2 stay f32.
    """
    n_hidden, n_feature = w1.shape
    n_output = w2.shape[0]
    HID = _round_up(n_hidden, pad_to)
    OUT = _round_up(n_output, pad_to)

    w1_t = jnp.zeros((n_feature, HID), jnp.float32).at[:, :n_hidden].set(
        w1.T.astype(jnp.float32))
    b1_p = jnp.zeros((1, HID), jnp.float32).at[:, :n_hidden].set(
        b1.astype(jnp.float32))
    w2_t = jnp.zeros((HID, OUT), mxu_dtype).at[:n_hidden, :n_output].set(
        w2.T.astype(mxu_dtype))
    b2_p = jnp.zeros((1, OUT), jnp.float32).at[:, :n_output].set(
        b2.astype(jnp.float32))
    return (w1_t, b1_p, w2_t, b2_p), n_output


def net_forward(x, params, n_output, *, max_tile_b=1024):
    """Pallas equivalent of Net.forward. x: (B, n_feature) float32."""
    w1_t, b1_p, w2_t, b2_p = params
    B, n_feature = x.shape
    HID = w1_t.shape[1]
    OUT = w2_t.shape[1]

    if B <= max_tile_b:
        # Single grid step: no batch padding, no wrapper-side pad op, one
        # output writeback.  Launch-latency-bound regime -> minimize steps.
        tile_b, B_pad, x_p = B, B, x
        semantics = ("arbitrary",)          # nothing to split across TCs
    else:
        # Large-batch path: big tiles amortize the ~0.35 us per-step cost;
        # weights stay VMEM-resident via the constant index_map.
        tile_b = max_tile_b
        B_pad = _round_up(B, tile_b)
        x_p = jnp.pad(x, ((0, B_pad - B), (0, 0))) if B_pad != B else x
        semantics = ("parallel",)

    flops = 2 * B_pad * (n_feature * HID + HID * OUT)
    bytes_accessed = ((x_p.size + w1_t.size + b1_p.size + b2_p.size
                       + B_pad * OUT) * 4
                      + w2_t.size * w2_t.dtype.itemsize)

    out = pl.pallas_call(
        _mlp_kernel,
        out_shape=jax.ShapeDtypeStruct((B_pad, OUT), jnp.float32),
        grid=(B_pad // tile_b,),
        in_specs=[
            pl.BlockSpec((tile_b, n_feature), lambda i: (i, 0)),   # x tile
            pl.BlockSpec((n_feature, HID), lambda i: (0, 0)),      # W1 resident
            pl.BlockSpec((1, HID), lambda i: (0, 0)),              # b1 resident
            pl.BlockSpec((HID, OUT), lambda i: (0, 0)),            # W2 resident
            pl.BlockSpec((1, OUT), lambda i: (0, 0)),              # b2 resident
        ],
        out_specs=pl.BlockSpec((tile_b, OUT), lambda i: (i, 0)),
        compiler_params=pltpu.CompilerParams(
            dimension_semantics=semantics),
        cost_estimate=pl.CostEstimate(flops=flops, transcendentals=0,
                                      bytes_accessed=bytes_accessed),
    )(x_p, w1_t, b1_p, w2_t, b2_p)

    # Slice away lane-padded output columns (and batch padding, if any).
    return out[:B, :n_output]


def _ref_forward(x, w1, b1, w2, b2):
    h = jnp.maximum(x @ w1.T + b1, 0.0)
    return h @ w2.T + b2


if __name__ == "__main__":
    # Module hyperparameters implied by the script: n_feature=2, n_output=2.
    n_feature, n_hidden, n_output = 2, 32, 2

    key = jax.random.PRNGKey(0)
    k_x0, k_x1, k_w1, k_b1, k_w2, k_b2 = jax.random.split(key, 6)

    # Reproduce the synthetic data construction deterministically:
    #   x0 ~ N(+2, 1), x1 ~ N(-2, 1), cat along dim 0 -> (200, 2) float32
    n_data = jnp.ones((100, 2), jnp.float32)
    x0 = 2.0 * n_data + jax.random.normal(k_x0, (100, 2), jnp.float32)
    x1 = -2.0 * n_data + jax.random.normal(k_x1, (100, 2), jnp.float32)
    x = jnp.concatenate([x0, x1], axis=0)                 # (200, 2)

    # Deterministic params (PyTorch Linear layout: (out, in) weights).
    w1 = 0.1 * jax.random.normal(k_w1, (n_hidden, n_feature), jnp.float32)
    b1 = 0.1 * jax.random.normal(k_b1, (n_hidden,), jnp.float32)
    w2 = 0.1 * jax.random.normal(k_w2, (n_output, n_hidden), jnp.float32)
    b2 = 0.1 * jax.random.normal(k_b2, (n_output,), jnp.float32)

    ref = _ref_forward(x, w1, b1, w2, b2)

    # Strict f32 path (exact check).
    params_f32, n_out = prepare_params(w1, b1, w2, b2, mxu_dtype=jnp.float32)
    out_f32 = jax.block_until_ready(net_forward(x, params_f32, n_out))
    assert out_f32.shape == (200, n_output)
    assert jnp.allclose(out_f32, ref, atol=1e-5, rtol=1e-5)

    # Default fast path: bf16 W2 / h MXU operands, f32 accumulation + layer 1.
    params_bf16, _ = prepare_params(w1, b1, w2, b2, mxu_dtype=jnp.bfloat16)
    out_bf16 = jax.block_until_ready(net_forward(x, params_bf16, n_out))
    assert out_bf16.shape == (200, n_output)
    assert jnp.allclose(out_bf16, ref, atol=5e-2, rtol=5e-2)

    print("KERNEL_OK")
</pallas_src>

<mosaic_0001>
module attributes {stable_mosaic.version = 11 : i64} {
  func.func @_mlp_kernel(%arg0: i32, %arg1: memref<200x2xf32, #tpu.memory_space<vmem>>, %arg2: memref<2x128xf32, #tpu.memory_space<vmem>>, %arg3: memref<1x128xf32, #tpu.memory_space<vmem>>, %arg4: memref<128x128xf32, #tpu.memory_space<vmem>>, %arg5: memref<1x128xf32, #tpu.memory_space<vmem>>, %arg6: memref<200x128xf32, #tpu.memory_space<vmem>>) attributes {dimension_semantics = [#tpu.dimension_semantics<arbitrary>], iteration_bounds = array<i64: 1>, scalar_prefetch = 0 : i64, scratch_operands = 0 : i64, tpu.core_type = #tpu.core_type<tc>, window_params = [{transform_indices = @transform_0, window_bounds = array<i64: 200, 2>}, {pipeline_mode = #tpu.pipeline_mode<synchronous>, transform_indices = @transform_1, window_bounds = array<i64: 2, 128>}, {pipeline_mode = #tpu.pipeline_mode<synchronous>, transform_indices = @transform_2, window_bounds = array<i64: 1, 128>}, {pipeline_mode = #tpu.pipeline_mode<synchronous>, transform_indices = @transform_3, window_bounds = array<i64: 128, 128>}, {pipeline_mode = #tpu.pipeline_mode<synchronous>, transform_indices = @transform_4, window_bounds = array<i64: 1, 128>}, {transform_indices = @transform_5, window_bounds = array<i64: 200, 128>}]} {
    %c0 = arith.constant 0 : index
    %c0_0 = arith.constant 0 : index
    %0 = vector.load %arg1[%c0, %c0_0] : memref<200x2xf32, #tpu.memory_space<vmem>>, vector<200x2xf32>
    %c0_1 = arith.constant 0 : index
    %c0_2 = arith.constant 0 : index
    %1 = vector.load %arg2[%c0_1, %c0_2] : memref<2x128xf32, #tpu.memory_space<vmem>>, vector<2x128xf32>
    %cst = arith.constant dense<0.000000e+00> : vector<200x128xf32>
    %2 = tpu.matmul %0, %1, %cst {dimension_numbers = #tpu.dot_dimension_numbers<[1], [0], [0], [1], [0, 0, 1, 1], [], []>} : vector<200x2xf32>, vector<2x128xf32>, vector<200x128xf32> -> vector<200x128xf32>
    %c0_3 = arith.constant 0 : index
    %c0_4 = arith.constant 0 : index
    %3 = vector.load %arg3[%c0_3, %c0_4] : memref<1x128xf32, #tpu.memory_space<vmem>>, vector<1x128xf32>
    %4 = vector.broadcast %3 : vector<1x128xf32> to vector<200x128xf32>
    %5 = arith.addf %2, %4 : vector<200x128xf32>
    %cst_5 = arith.constant 0.000000e+00 : f32
    %6 = vector.broadcast %cst_5 : f32 to vector<200x128xf32>
    %7 = arith.maximumf %5, %6 : vector<200x128xf32>
    %c0_6 = arith.constant 0 : index
    %c0_7 = arith.constant 0 : index
    %8 = vector.load %arg4[%c0_6, %c0_7] : memref<128x128xf32, #tpu.memory_space<vmem>>, vector<128x128xf32>
    %cst_8 = arith.constant dense<0.000000e+00> : vector<200x128xf32>
    %9 = tpu.matmul %7, %8, %cst_8 {dimension_numbers = #tpu.dot_dimension_numbers<[1], [0], [0], [1], [0, 0, 1, 1], [], []>} : vector<200x128xf32>, vector<128x128xf32>, vector<200x128xf32> -> vector<200x128xf32>
    %c0_9 = arith.constant 0 : index
    %c0_10 = arith.constant 0 : index
    %10 = vector.load %arg5[%c0_9, %c0_10] : memref<1x128xf32, #tpu.memory_space<vmem>>, vector<1x128xf32>
    %11 = vector.broadcast %10 : vector<1x128xf32> to vector<200x128xf32>
    %12 = arith.addf %9, %11 : vector<200x128xf32>
    %c0_11 = arith.constant 0 : index
    %c0_12 = arith.constant 0 : index
    %13 = vector.load %arg6[%c0_11, %c0_12] : memref<200x128xf32, #tpu.memory_space<vmem>>, vector<200x128xf32>
    tpu.vector_store %arg6[%c0_11, %c0_12], %12 {strides = array<i32>} : memref<200x128xf32, #tpu.memory_space<vmem>>, vector<200x128xf32>,
    return
  }
  func.func @transform_0(%arg0: i32) -> (i32, i32) {
    %c0_i32 = arith.constant 0 : i32
    %c0_i32_0 = arith.constant 0 : i32
    return %arg0, %c0_i32 : i32, i32
  }
  func.func @transform_1(%arg0: i32) -> (i32, i32) {
    %c0_i32 = arith.constant 0 : i32
    %c0_i32_0 = arith.constant 0 : i32
    %c0_i32_1 = arith.constant 0 : i32
    return %c0_i32, %c0_i32_0 : i32, i32
  }
  func.func @transform_2(%arg0: i32) -> (i32, i32) {
    %c0_i32 = arith.constant 0 : i32
    %c0_i32_0 = arith.constant 0 : i32
    %c0_i32_1 = arith.constant 0 : i32
    return %c0_i32, %c0_i32_0 : i32, i32
  }
  func.func @transform_3(%arg0: i32) -> (i32, i32) {
    %c0_i32 = arith.constant 0 : i32
    %c0_i32_0 = arith.constant 0 : i32
    %c0_i32_1 = arith.constant 0 : i32
    return %c0_i32, %c0_i32_0 : i32, i32
  }
  func.func @transform_4(%arg0: i32) -> (i32, i32) {
    %c0_i32 = arith.constant 0 : i32
    %c0_i32_0 = arith.constant 0 : i32
    %c0_i32_1 = arith.constant 0 : i32
    return %c0_i32, %c0_i32_0 : i32, i32
  }
  func.func @transform_5(%arg0: i32) -> (i32, i32) {
    %c0_i32 = arith.constant 0 : i32
    %c0_i32_0 = arith.constant 0 : i32
    return %arg0, %c0_i32 : i32, i32
  }
}

</mosaic_0001>

<bundles_post_ra>
// kernel: tpu_custom_call.1
= control target key start
LH: loop header
LB: loop body
LE: loop exit
PB: predicated region body
PF: predicated region fallthrough
CT: control target
= control target key end

     0   :  { %vm127_vm0 = vcmask 1041408   ;;  %vm51_vm1 = vcmask 15360   ;;  %s740_s0 = inlined_call_operand.vmem [shape: f32[200,2], index: 0, kind: input, shape index: {}]   ;;  %s741_s1 = inlined_call_operand.vmem [shape: f32[2,128], index: 1, kind: input, shape index: {}]   ;;  %s742_s2 = inlined_call_operand.vmem [shape: f32[1,128], index: 2, kind: input, shape index: {}]   ;;  %s743_s3 = inlined_call_operand.vmem [shape: f32[128,128], index: 3, kind: input, shape index: {}]   ;;  %s744_s4 = inlined_call_operand.vmem [shape: f32[1,128], index: 4, kind: input, shape index: {}]   ;;  %s745_s5 = inlined_call_operand.hbm [shape: f32[200,128], index: 5, kind: output, shape index: {}]  }
   0x1   :  { %v46_v0 = vld [vmem:[%s741_s1] sm:$0x3] }
   0x2   :  { %v21_v1 = vld [vmem:[%s740_s0] sm:$0xff]  ;;  %403 = vmatpush.msk.msra.mxu0 %vm127_vm0, %v46_v0  ;;  %429 = vmatpush.msk.msra.mxu3 %vm127_vm0, %v46_v0 }
   0x3   :  { %404 = vmatmul.msk.f32.vlgmr.msra.gmra.mxu0 %vm51_vm1, %v21_v1 }
   0x4   :  { %10 = vsyncpa [#allocation3], 0  ;;  %v22_v2 = vld [vmem:[%s740_s0 + $0x8] sm:$0xff]  ;;  %v23_v3 = vld [vmem:[%s740_s0 + $0x10] sm:$0xff]  ;;  %s391_s27 = sshll.u32 %s745_s5, 4  ;;  %s494_s28 = smov 128   ;;  %s392_s27 = int_to_ptr.hbm [resolvable:$true] %s391_s27 }
   0x5   :  { %v24_v4 = vld [vmem:[%s740_s0 + $0x18] sm:$0xff]  ;;  %v25_v5 = vld [vmem:[%s740_s0 + $0x20] sm:$0xff]  ;;  %v26_v6 = vld [vmem:[%s740_s0 + $0x28] sm:$0xff]  ;;  %s495_s29 = smov 8  }
   0x6   :  { %v27_v7 = vld [vmem:[%s740_s0 + $0x30] sm:$0xff]  ;;  %v28_v8 = vld [vmem:[%s740_s0 + $0x38] sm:$0xff]  ;;  %v29_v10 = vld [vmem:[%s740_s0 + $0x40] sm:$0xff] }
   0x7   :  { %v36_v9 = vld [vmem:[%s740_s0 + $0x78] sm:$0xff]  ;;  %v37_v11 = vld [vmem:[%s740_s0 + $0x80] sm:$0xff]  ;;  %v262_v13 = vld [vmem:[%s743_s3 + $0x70] sm:$0xff] }
   0x8   :  { %419 = vmatmul.msk.f32.vlgmr.msra.gmra.mxu3 %vm51_vm1, %v36_v9  ;;  %v263_v12 = vld [vmem:[%s743_s3 + $0x78] sm:$0xff]  ;;  %v261_v14 = vld [vmem:[%s743_s3 + $0x68] sm:$0xff]  ;;  %v260_v16 = vld [vmem:[%s743_s3 + $0x60] sm:$0xff] }
   0x9   :  { %268 = vmatpush.msra.mxu1 %v263_v12  ;;  %430 = vmatpush.msra.mxu2 %v263_v12  ;;  %v30_v15 = vld [vmem:[%s740_s0 + $0x48] sm:$0xff]  ;;  %v259_v18 = vld [vmem:[%s743_s3 + $0x58] sm:$0xff]  ;;  %v258_v19 = vld [vmem:[%s743_s3 + $0x50] sm:$0xff] }
   0xa   :  { %431 = vmatpush.msrb.mxu3 %v263_v12  ;;  %v38_v17 = vld [vmem:[%s740_s0 + $0x88] sm:$0xff]  ;;  %v31_v21 = vld [vmem:[%s740_s0 + $0x50] sm:$0xff]  ;;  %v256_v22 = vld [vmem:[%s743_s3 + $0x40] sm:$0xff] }
   0xb   :  { %405 = vmatmul.msk.f32.gmra.mxu0 %vm51_vm1, %v22_v2  ;;  %269 = vmatpush.msra.mxu1 %v262_v13  ;;  %v257_v20 = vld [vmem:[%s743_s3 + $0x48] sm:$0xff]  ;;  %v39_v23 = vld [vmem:[%s740_s0 + $0x90] sm:$0xff]  ;;  %v255_v24 = vld [vmem:[%s743_s3 + $0x38] sm:$0xff] }
   0xc   :  { %432 = vmatpush.msra.mxu2 %v262_v13  ;;  %433 = vmatpush.msrb.mxu3 %v262_v13  ;;  %v254_v25 = vld [vmem:[%s743_s3 + $0x30] sm:$0xff]  ;;  %v253_v26 = vld [vmem:[%s743_s3 + $0x28] sm:$0xff]  ;;  %v32_v27 = vld [vmem:[%s740_s0 + $0x58] sm:$0xff] }
   0xd   :  { %270 = vmatpush.msra.mxu1 %v261_v14  ;;  %v252_v28 = vld [vmem:[%s743_s3 + $0x20] sm:$0xff]  ;;  %v40_v29 = vld [vmem:[%s740_s0 + $0x98] sm:$0xff]  ;;  %v250_v31 = vld [vmem:[%s743_s3 + $0x10] sm:$0xff] }
   0xe   :  { %434 = vmatpush.msra.mxu2 %v261_v14  ;;  %435 = vmatpush.msrb.mxu3 %v261_v14  ;;  %v251_v30 = vld [vmem:[%s743_s3 + $0x18] sm:$0xff]  ;;  %v33_v32 = vld [vmem:[%s740_s0 + $0x60] sm:$0xff]  ;;  %v249_v33 = vld [vmem:[%s743_s3 + $0x8] sm:$0xff] }
   0xf   :  { %271 = vmatpush.msra.mxu1 %v260_v16  ;;  %v248_v34 = vld [vmem:[%s743_s3] sm:$0xff]  ;;  %v34_v36 = vld [vmem:[%s740_s0 + $0x68] sm:$0xff]  ;;  %v35_v38 = vld [vmem:[%s740_s0 + $0x70] sm:$0xff] }
  0x10   :  { %420 = vmatmul.msk.f32.gmra.mxu3 %vm51_vm1, %v37_v11  ;;  %436 = vmatpush.msra.mxu2 %v260_v16  ;;  %v41_v35 = vld [vmem:[%s740_s0 + $0xa0] sm:$0xff]  ;;  %v42_v37 = vld [vmem:[%s740_s0 + $0xa8] sm:$0xff]  ;;  %v43_v39 = vld [vmem:[%s740_s0 + $0xb0] sm:$0xff] }
  0x11   :  { %437 = vmatpush.msrb.mxu3 %v260_v16  ;;  %272 = vmatpush.msra.mxu1 %v259_v18  ;;  %v44_v40 = vld [vmem:[%s740_s0 + $0xb8] sm:$0xff]  ;;  %v676_v41 = vld [vmem:[%s742_s2] ss:$0 sm:$0xff] }
  0x12   :  { %438 = vmatpush.msra.mxu2 %v259_v18  ;;  %v45_v45 = vld [vmem:[%s740_s0 + $0xc0] sm:$0xff] }
  0x13   :  { %406 = vmatmul.msk.f32.gmra.mxu0 %vm51_vm1, %v23_v3  ;;  %439 = vmatpush.msrb.mxu3 %v259_v18 }
  0x14   :  { %273 = vmatpush.msra.mxu1 %v258_v19  ;;  %440 = vmatpush.msra.mxu2 %v258_v19 }
  0x15   :  { %441 = vmatpush.msrb.mxu3 %v258_v19 }
  0x16   :  { %274 = vmatpush.msra.mxu1 %v257_v20  ;;  %442 = vmatpush.msra.mxu2 %v257_v20 }
  0x17   :  { %443 = vmatpush.msrb.mxu3 %v257_v20 }
  0x18   :  { %421 = vmatmul.msk.f32.gmra.mxu3 %vm51_vm1, %v38_v17  ;;  %275 = vmatpush.msra.mxu1 %v256_v22 }
  0x19   :  { %444 = vmatpush.msra.mxu2 %v256_v22  ;;  %445 = vmatpush.msrb.mxu3 %v256_v22 }
  0x1a   :  { %276 = vmatpush.msra.mxu1 %v255_v24 }
  0x1b   :  { %407 = vmatmul.msk.f32.gmra.mxu0 %vm51_vm1, %v24_v4  ;;  %446 = vmatpush.msra.mxu2 %v255_v24 }
  0x1c   :  { %277 = vmatpush.msra.mxu1 %v254_v25  ;;  %447 = vmatpush.msrb.mxu3 %v255_v24 }
  0x1d   :  { %448 = vmatpush.msra.mxu2 %v254_v25 }
  0x1e   :  { %278 = vmatpush.msra.mxu1 %v253_v26  ;;  %449 = vmatpush.msrb.mxu3 %v254_v25 }
  0x1f   :  { %450 = vmatpush.msra.mxu2 %v253_v26 }
  0x20   :  { %422 = vmatmul.msk.f32.gmra.mxu3 %vm51_vm1, %v39_v23  ;;  %279 = vmatpush.msra.mxu1 %v252_v28 }
  0x21   :  { %452 = vmatpush.msra.mxu2 %v252_v28  ;;  %451 = vmatpush.msrb.mxu3 %v253_v26 }
  0x22   :  { %280 = vmatpush.msra.mxu1 %v251_v30 }
  0x23   :  { %408 = vmatmul.msk.f32.gmra.mxu0 %vm51_vm1, %v25_v5  ;;  %454 = vmatpush.msra.mxu2 %v251_v30 }
  0x24   :  { %281 = vmatpush.msra.mxu1 %v250_v31  ;;  %453 = vmatpush.msrb.mxu3 %v252_v28 }
  0x25   :  { %456 = vmatpush.msra.mxu2 %v250_v31 }
  0x26   :  { %282 = vmatpush.msra.mxu1 %v249_v33  ;;  %455 = vmatpush.msrb.mxu3 %v251_v30 }
  0x27   :  { %458 = vmatpush.msra.mxu2 %v249_v33 }
  0x28   :  { %423 = vmatmul.msk.f32.gmra.mxu3 %vm51_vm1, %v40_v29  ;;  %283 = vmatpush.msra.mxu1 %v248_v34 }
  0x29   :  { %460 = vmatpush.msra.mxu2 %v248_v34  ;;  %457 = vmatpush.msrb.mxu3 %v250_v31 }
  0x2b   :  { %409 = vmatmul.msk.f32.gmra.mxu0 %vm51_vm1, %v26_v6  ;;  %459 = vmatpush.msrb.mxu3 %v249_v33 }
  0x2d   :  { %461 = vmatpush.msrb.mxu3 %v248_v34 }
  0x30   :  { %424 = vmatmul.msk.f32.gmra.mxu3 %vm51_vm1, %v41_v35 }
  0x33   :  { %410 = vmatmul.msk.f32.gmra.mxu0 %vm51_vm1, %v27_v7 }
  0x38   :  { %425 = vmatmul.msk.f32.gmra.mxu3 %vm51_vm1, %v42_v37  ;;  %v703_v37 = vld [vmem:[%s744_s4] ss:$0 sm:$0xff]  ;;  %s493_s4 = smov [#allocation2]  }
  0x39   :  { %s389_s25 = sshll.u32 %s493_s4, 4  ;;  %s390_s25 = int_to_ptr.vmem [resolvable:$true] %s389_s25 }
  0x3b   :  { %411 = vmatmul.msk.f32.gmra.mxu0 %vm51_vm1, %v28_v8 }
  0x40   :  { %426 = vmatmul.msk.f32.gmra.mxu3 %vm51_vm1, %v43_v39 }
  0x43   :  { %412 = vmatmul.msk.f32.gmra.mxu0 %vm51_vm1, %v29_v10 }
  0x48   :  { %427 = vmatmul.msk.f32.gmra.mxu3 %vm51_vm1, %v44_v40 }
  0x4b   :  { %413 = vmatmul.msk.f32.gmra.mxu0 %vm51_vm1, %v30_v15 }
  0x50   :  { %428 = vmatmul.msk.f32.gmra.mxu3 %vm51_vm1, %v45_v45 }
  0x53   :  { %414 = vmatmul.msk.f32.gmra.mxu0 %vm51_vm1, %v31_v21 }
  0x5b   :  { %415 = vmatmul.msk.f32.gmra.mxu0 %vm51_vm1, %v32_v27 }
  0x63   :  { %416 = vmatmul.msk.f32.gmra.mxu0 %vm51_vm1, %v33_v32 }
  0x6b   :  { %417 = vmatmul.msk.f32.gmra.mxu0 %vm51_vm1, %v34_v36 }
  0x73   :  { %418 = vmatmul.msk.f32.gmra.mxu0 %vm51_vm1, %v35_v38 }
  0x80   :  { %v148_v42 = vpop.f32.mrf.mxu0 }
  0x81   :  { %v149_v43 = vadd.f32 %v676_v41, %v148_v42 }
  0x83   :  { %v223_v44 = vmax.f32 %v149_v43, 0.0 }
  0x85   :  { %284 = vmatmul.f32.vlgmr.msra.gmra.mxu1 %v223_v44 }
  0x88   :  { %v151_v46 = vpop.f32.mrf.mxu0 }
  0x89   :  { %v152_v47 = vadd.f32 %v676_v41, %v151_v46 }
  0x8b   :  { %v224_v48 = vmax.f32 %v152_v47, 0.0  ;;  %v193_v4 = vpop.f32.mrf.mxu3 }
  0x8c   :  { %v194_v31 = vadd.f32 %v676_v41, %v193_v4 }
  0x8d   :  { %287 = vmatmul.f32.gmra.mxu1 %v224_v48 }
  0x8e   :  { %v238_v34 = vmax.f32 %v194_v31, 0.0 }
  0x90   :  { %v154_v49 = vpop.f32.mrf.mxu0 }
  0x91   :  { %v155_v50 = vadd.f32 %v676_v41, %v154_v49 }
  0x93   :  { %v225_v51 = vmax.f32 %v155_v50, 0.0  ;;  %v196_v8 = vpop.f32.mrf.mxu3 }
  0x94   :  { %v197_v36 = vadd.f32 %v676_v41, %v196_v8 }
  0x95   :  { %290 = vmatmul.f32.gmra.mxu1 %v225_v51 }
  0x96   :  { %v239_v42 = vmax.f32 %v197_v36, 0.0 }
  0x98   :  { %v157_v52 = vpop.f32.mrf.mxu0 }
  0x99   :  { %v158_v53 = vadd.f32 %v676_v41, %v157_v52 }
  0x9b   :  { %v226_v54 = vmax.f32 %v158_v53, 0.0  ;;  %v199_v12 = vpop.f32.mrf.mxu3 }
  0x9c   :  { %v200_v45 = vadd.f32 %v676_v41, %v199_v12 }
  0x9d   :  { %293 = vmatmul.f32.gmra.mxu1 %v226_v54 }
  0x9e   :  { %v240_v49 = vmax.f32 %v200_v45, 0.0 }
  0xa0   :  { %v160_v55 = vpop.f32.mrf.mxu0 }
  0xa1   :  { %v161_v56 = vadd.f32 %v676_v41, %v160_v55 }
  0xa3   :  { %v227_v57 = vmax.f32 %v161_v56, 0.0  ;;  %v202_v16 = vpop.f32.mrf.mxu3 }
  0xa4   :  { %v203_v52 = vadd.f32 %v676_v41, %v202_v16 }
  0xa5   :  { %296 = vmatmul.f32.gmra.mxu1 %v227_v57 }
  0xa6   :  { %v241_v54 = vmax.f32 %v203_v52, 0.0 }
  0xa8   :  { %v163_v58 = vpop.f32.mrf.mxu0 }
  0xa9   :  { %v164_v59 = vadd.f32 %v676_v41, %v163_v58 }
  0xab   :  { %v228_v60 = vmax.f32 %v164_v59, 0.0  ;;  %v205_v20 = vpop.f32.mrf.mxu3 }
  0xac   :  { %v206_v56 = vadd.f32 %v676_v41, %v205_v20 }
  0xad   :  { %299 = vmatmul.f32.gmra.mxu1 %v228_v60 }
  0xae   :  { %v242_v58 = vmax.f32 %v206_v56, 0.0 }
  0xb0   :  { %v166_v61 = vpop.f32.mrf.mxu0 }
  0xb1   :  { %v167_v62 = vadd.f32 %v676_v41, %v166_v61 }
  0xb3   :  { %v229_v63 = vmax.f32 %v167_v62, 0.0  ;;  %v208_v24 = vpop.f32.mrf.mxu3 }
  0xb4   :  { %v209_v60 = vadd.f32 %v676_v41, %v208_v24 }
  0xb5   :  { %302 = vmatmul.f32.gmra.mxu1 %v229_v63 }
  0xb6   :  { %v243_v62 = vmax.f32 %v209_v60, 0.0 }
  0xb8   :  { %v169_v0 = vpop.f32.mrf.mxu0 }
  0xb9   :  { %v170_v1 = vadd.f32 %v676_v41, %v169_v0 }
  0xbb   :  { %v230_v2 = vmax.f32 %v170_v1, 0.0  ;;  %v211_v28 = vpop.f32.mrf.mxu3 }
  0xbc   :  { %v212_v0 = vadd.f32 %v676_v41, %v211_v28 }
  0xbd   :  { %305 = vmatmul.f32.gmra.mxu1 %v230_v2 }
  0xbe   :  { %v244_v2 = vmax.f32 %v212_v0, 0.0 }
  0xc0   :  { %v172_v3 = vpop.f32.mrf.mxu0 }
  0xc1   :  { %v173_v5 = vadd.f32 %v676_v41, %v172_v3 }
  0xc3   :  { %v231_v6 = vmax.f32 %v173_v5, 0.0  ;;  %v214_v32 = vpop.f32.mrf.mxu3 }
  0xc4   :  { %v215_v33 = vadd.f32 %v676_v41, %v214_v32 }
  0xc5   :  { %308 = vmatmul.f32.gmra.mxu1 %v231_v6 }
  0xc6   :  { %v245_v35 = vmax.f32 %v215_v33, 0.0 }
  0xc8   :  { %v175_v7 = vpop.f32.mrf.mxu0  ;;  %350 = vmatmul.f32.vlgmr.msrb.gmra.mxu3 %v245_v35 }
  0xc9   :  { %v176_v9 = vadd.f32 %v676_v41, %v175_v7 }
  0xcb   :  { %v232_v10 = vmax.f32 %v176_v9, 0.0  ;;  %v217_v38 = vpop.f32.mrf.mxu3 }
  0xcc   :  { %v218_v39 = vadd.f32 %v676_v41, %v217_v38 }
  0xcd   :  { %311 = vmatmul.f32.gmra.mxu1 %v232_v10 }
  0xce   :  { %v246_v44 = vmax.f32 %v218_v39, 0.0 }
  0xd0   :  { %v178_v11 = vpop.f32.mrf.mxu0  ;;  %353 = vmatmul.f32.gmra.mxu3 %v246_v44 }
  0xd1   :  { %v179_v13 = vadd.f32 %v676_v41, %v178_v11 }
  0xd3   :  { %v233_v14 = vmax.f32 %v179_v13, 0.0  ;;  %v220_v46 = vpop.f32.mrf.mxu3 }
  0xd4   :  { %v221_v47 = vadd.f32 %v676_v41, %v220_v46 }
  0xd5   :  { %314 = vmatmul.f32.gmra.mxu1 %v233_v14 }
  0xd6   :  { %v247_v51 = vmax.f32 %v221_v47, 0.0 }
  0xd8   :  { %v181_v15 = vpop.f32.mrf.mxu0  ;;  %356 = vmatmul.f32.gmra.mxu3 %v247_v51 }
  0xd9   :  { %v182_v17 = vadd.f32 %v676_v41, %v181_v15 }
  0xdb   :  { %v234_v18 = vmax.f32 %v182_v17, 0.0 }
  0xdd   :  { %317 = vmatmul.f32.vlgmr.msra.gmra.mxu2 %v234_v18 }
  0xe0   :  { %v184_v19 = vpop.f32.mrf.mxu0 }
  0xe1   :  { %v185_v21 = vadd.f32 %v676_v41, %v184_v19 }
  0xe3   :  { %v235_v22 = vmax.f32 %v185_v21, 0.0 }
  0xe5   :  { %320 = vmatmul.f32.gmra.mxu2 %v235_v22 }
  0xe8   :  { %v187_v23 = vpop.f32.mrf.mxu0 }
  0xe9   :  { %v188_v25 = vadd.f32 %v676_v41, %v187_v23 }
  0xeb   :  { %v236_v26 = vmax.f32 %v188_v25, 0.0 }
  0xed   :  { %323 = vmatmul.f32.gmra.mxu2 %v236_v26 }
  0xf0   :  { %v190_v27 = vpop.f32.mrf.mxu0 }
  0xf1   :  { %v191_v29 = vadd.f32 %v676_v41, %v190_v27 }
  0xf3   :  { %v237_v30 = vmax.f32 %v191_v29, 0.0 }
  0xf5   :  { %326 = vmatmul.f32.gmra.mxu2 %v237_v30 }
  0xfd   :  { %329 = vmatmul.f32.gmra.mxu2 %v238_v34 }
 0x102   :  { %v285_v40 = vpop.f32.mrf.mxu1 }
 0x103   :  { %v286_v43 = vadd.f32 %v703_v37, %v285_v40 }
 0x105   :  { %360 = vst [vmem:[#allocation2] sm:$0xff] %v286_v43  ;;  %332 = vmatmul.f32.gmra.mxu2 %v239_v42 }
 0x10a   :  { %v288_v48 = vpop.f32.mrf.mxu1 }
 0x10b   :  { %v289_v50 = vadd.f32 %v703_v37, %v288_v48 }
 0x10d   :  { %361 = vst [vmem:[#allocation2 + $0x8] sm:$0xff] %v289_v50  ;;  %335 = vmatmul.f32.gmra.mxu2 %v240_v49 }
 0x112   :  { %v291_v53 = vpop.f32.mrf.mxu1 }
 0x113   :  { %v292_v55 = vadd.f32 %v703_v37, %v291_v53 }
 0x115   :  { %362 = vst [vmem:[#allocation2 + $0x10] sm:$0xff] %v292_v55  ;;  %338 = vmatmul.f32.gmra.mxu2 %v241_v54 }
 0x11a   :  { %v294_v57 = vpop.f32.mrf.mxu1 }
 0x11b   :  { %v295_v59 = vadd.f32 %v703_v37, %v294_v57 }
 0x11d   :  { %363 = vst [vmem:[#allocation2 + $0x18] sm:$0xff] %v295_v59  ;;  %341 = vmatmul.f32.gmra.mxu2 %v242_v58 }
 0x122   :  { %v297_v61 = vpop.f32.mrf.mxu1 }
 0x123   :  { %v298_v63 = vadd.f32 %v703_v37, %v297_v61 }
 0x125   :  { %364 = vst [vmem:[#allocation2 + $0x20] sm:$0xff] %v298_v63  ;;  %344 = vmatmul.f32.gmra.mxu2 %v243_v62 }
 0x12a   :  { %v300_v1 = vpop.f32.mrf.mxu1 }
 0x12b   :  { %v301_v3 = vadd.f32 %v703_v37, %v300_v1 }
 0x12d   :  { %365 = vst [vmem:[#allocation2 + $0x28] sm:$0xff] %v301_v3  ;;  %347 = vmatmul.f32.gmra.mxu2 %v244_v2 }
 0x132   :  { %v303_v4 = vpop.f32.mrf.mxu1 }
 0x133   :  { %v304_v5 = vadd.f32 %v703_v37, %v303_v4 }
 0x135   :  { %366 = vst [vmem:[#allocation2 + $0x30] sm:$0xff] %v304_v5 }
 0x13a   :  { %v306_v6 = vpop.f32.mrf.mxu1 }
 0x13b   :  { %v307_v7 = vadd.f32 %v703_v37, %v306_v6 }
 0x13d   :  { %367 = vst [vmem:[#allocation2 + $0x38] sm:$0xff] %v307_v7 }
 0x142   :  { %v309_v8 = vpop.f32.mrf.mxu1 }
 0x143   :  { %v310_v9 = vadd.f32 %v703_v37, %v309_v8 }
 0x145   :  { %368 = vst [vmem:[#allocation2 + $0x40] sm:$0xff] %v310_v9 }
 0x14a   :  { %v312_v10 = vpop.f32.mrf.mxu1 }
 0x14b   :  { %v313_v41 = vadd.f32 %v703_v37, %v312_v10  ;;  %v351_v22 = vpop.f32.mrf.mxu3 }
 0x14c   :  { %v352_v24 = vadd.f32 %v703_v37, %v351_v22 }
 0x14d   :  { %369 = vst [vmem:[#allocation2 + $0x48] sm:$0xff] %v313_v41 }
 0x14e   :  { %382 = vst [vmem:[#allocation2 + $0xb0] sm:$0xff] %v352_v24 }
 0x152   :  { %v315_v11 = vpop.f32.mrf.mxu1 }
 0x153   :  { %v316_v12 = vadd.f32 %v703_v37, %v315_v11  ;;  %v354_v26 = vpop.f32.mrf.mxu3 }
 0x154   :  { %v355_v28 = vadd.f32 %v703_v37, %v354_v26 }
 0x155   :  { %370 = vst [vmem:[#allocation2 + $0x50] sm:$0xff] %v316_v12 }
 0x156   :  { %383 = vst [vmem:[#allocation2 + $0xb8] sm:$0xff] %v355_v28 }
 0x15b   :  { %v357_v30 = vpop.f32.mrf.mxu3 }
 0x15c   :  { %v358_v32 = vadd.f32 %v703_v37, %v357_v30 }
 0x15e   :  { %384 = vst [vmem:[#allocation2 + $0xc0] sm:$0xff] %v358_v32 }
 0x160   :  { %v318_v13 = vpop.f32.mrf.mxu2 }
 0x161   :  { %v319_v14 = vadd.f32 %v703_v37, %v318_v13 }
 0x163   :  { %371 = vst [vmem:[#allocation2 + $0x58] sm:$0xff] %v319_v14 }
 0x168   :  { %v321_v15 = vpop.f32.mrf.mxu2 }
 0x169   :  { %v322_v16 = vadd.f32 %v703_v37, %v321_v15 }
 0x16b   :  { %372 = vst [vmem:[#allocation2 + $0x60] sm:$0xff] %v322_v16 }
 0x170   :  { %v324_v17 = vpop.f32.mrf.mxu2 }
 0x171   :  { %v325_v18 = vadd.f32 %v703_v37, %v324_v17 }
 0x173   :  { %373 = vst [vmem:[#allocation2 + $0x68] sm:$0xff] %v325_v18 }
 0x178   :  { %v327_v19 = vpop.f32.mrf.mxu2 }
 0x179   :  { %v328_v20 = vadd.f32 %v703_v37, %v327_v19 }
 0x17b   :  { %374 = vst [vmem:[#allocation2 + $0x70] sm:$0xff] %v328_v20 }
 0x180   :  { %v330_v21 = vpop.f32.mrf.mxu2 }
 0x181   :  { %v331_v23 = vadd.f32 %v703_v37, %v330_v21 }
 0x183   :  { %375 = vst [vmem:[#allocation2 + $0x78] sm:$0xff] %v331_v23 }
 0x188   :  { %v333_v25 = vpop.f32.mrf.mxu2 }
 0x189   :  { %v334_v27 = vadd.f32 %v703_v37, %v333_v25 }
 0x18b   :  { %376 = vst [vmem:[#allocation2 + $0x80] sm:$0xff] %v334_v27 }
 0x190   :  { %v336_v29 = vpop.f32.mrf.mxu2 }
 0x191   :  { %v337_v31 = vadd.f32 %v703_v37, %v336_v29 }
 0x193   :  { %377 = vst [vmem:[#allocation2 + $0x88] sm:$0xff] %v337_v31 }
 0x198   :  { %v339_v33 = vpop.f32.mrf.mxu2 }
 0x199   :  { %v340_v34 = vadd.f32 %v703_v37, %v339_v33 }
 0x19b   :  { %378 = vst [vmem:[#allocation2 + $0x90] sm:$0xff] %v340_v34 }
 0x1a0   :  { %v342_v35 = vpop.f32.mrf.mxu2 }
 0x1a1   :  { %v343_v36 = vadd.f32 %v703_v37, %v342_v35 }
 0x1a3   :  { %379 = vst [vmem:[#allocation2 + $0x98] sm:$0xff] %v343_v36 }
 0x1a8   :  { %v345_v38 = vpop.f32.mrf.mxu2 }
 0x1a9   :  { %v346_v39 = vadd.f32 %v703_v37, %v345_v38 }
 0x1ab   :  { %380 = vst [vmem:[#allocation2 + $0xa0] sm:$0xff] %v346_v39 }
 0x1b0   :  { %v348_v40 = vpop.f32.mrf.mxu2 }
 0x1b1   :  { %v349_v42 = vadd.f32 %v703_v37, %v348_v40 }
 0x1b3   :  { %381 = vst [vmem:[#allocation2 + $0xa8] sm:$0xff] %v349_v42 }
 0x1b4   :  { %397 = dma.vmem_to_hbm [thread:$0]  %s390_s25, 3200, %s392_s27, [#allocation3], %s494_s28, %s494_s28, %s495_s29  }
 0x1b5   :  { %491 = dma.done.wait [#allocation3], 3200  }
 0x1b6   :  { %492 = vsyncadd [#allocation3], 4294964096 }
 0x1b7   :  { %402 = vsyncpa [#allocation3], 1 }

</bundles_post_ra>
